<compile_context>
chip_gen: v7x
topology: tpu7x:2x2x1
jax: 0.10.0
libtpu: 0.0.40
codegen_flags: <defaults>
</compile_context>

<pallas_src>
import functools
import math

import jax
import jax.numpy as jnp
from jax import lax
from jax.experimental import pallas as pl
from jax.experimental.pallas import tpu as pltpu


def _nce_kernel(emb_ref, w_ref, b_ref, lkq_ref, out_ref, scores_ref, *,
                norm_term, n_valid, tile_n):
    i = pl.program_id(0)
    j_total = w_ref.shape[0]

    emb = emb_ref[...].astype(jnp.float32)            # (E, TN)  bf16 on the wire

    # Sampled scores, one j-row at a time: scores[j, n] = <emb[:, n], w[j, :, n]>.
    # Writing each row into the VMEM scratch bounds live ranges (no (J, E, TN)
    # broadcast product in registers).
    @pl.loop(0, j_total)
    def _(jj):
        w_row = w_ref[jj].astype(jnp.float32)         # (E, TN)
        scores_ref[pl.ds(jj, 1), :] = jnp.sum(w_row * emb, axis=0, keepdims=True)

    # log P_model(id) = scores + bias - lnZ   (the exp->log of the reference cancels).
    log_p = scores_ref[...] + b_ref[...] - jnp.float32(norm_term)   # (J, TN)
    log_kq = lkq_ref[...]                                           # (J, TN) = log(k * P_noise)

    # log(x / (x + y)) evaluated in the log domain (robust to exp overflow; all
    # transcendentals land on the EUP slot, which is idle under the DMA wall).
    m = jnp.maximum(log_p, log_kq)
    log_denom = m + jnp.log(jnp.exp(log_p - m) + jnp.exp(log_kq - m))

    # Row 0 is the target column (rnn_loss term), rows 1.. are the noise samples.
    is_target_row = lax.broadcasted_iota(jnp.int32, (j_total, tile_n), 0) == 0
    contrib = jnp.where(is_target_row, log_p, log_kq) - log_denom   # (J, TN)
    per_token = jnp.sum(contrib, axis=0, keepdims=True)             # (1, TN)

    # Zero out rows that only exist because N was padded up to a tile multiple.
    col = i * tile_n + lax.broadcasted_iota(jnp.int32, (1, tile_n), 1)
    out_ref[...] = jnp.where(col < n_valid, -per_token, jnp.float32(0.0))


def nce_loss_pallas(emb, target, noise_idx, weight, bias, noise, *,
                    noise_ratio=10, norm_term=9, size_average=True,
                    compute_dtype=jnp.bfloat16, tile_n=None):
    """Training-mode NCELoss.forward.

    emb:       (N, E) float32   RNN output embeddings
    target:    (N,)   int32     true token ids
    noise_idx: (N, Nr) int32    per-word noise sample ids
    weight:    (V, E) float32   decoder weight
    bias:      (V,)   float32   decoder bias
    noise:     (V,)   float32   noise distribution (probabilities)
    """
    emb = emb.astype(jnp.float32)
    weight = weight.astype(jnp.float32)
    bias = bias.astype(jnp.float32)
    noise = noise.astype(jnp.float32)

    n, e = emb.shape
    j = 1 + noise_ratio

    # Sampled gather in the wrapper: only the J = 1 + noise_ratio rows each token
    # actually touches ever leave HBM.  Layout keeps the token axis on the lanes.
    idx_t = jnp.concatenate(
        [target[:, None], noise_idx], axis=1).astype(jnp.int32).T             # (J, N)
    w_sel = jnp.transpose(weight.astype(compute_dtype)[idx_t], (0, 2, 1))     # (J, E, N) bf16
    emb_t = emb.astype(compute_dtype).T                                       # (E, N)    bf16
    b_sel = bias[idx_t]                                                       # (J, N)    f32
    # Pre-computed log(k * P_noise) table gathered once (removes J logs/token in-kernel).
    lkq_sel = (jnp.log(noise) + jnp.float32(math.log(float(noise_ratio))))[idx_t]  # (J, N)

    in_bytes = jnp.dtype(compute_dtype).itemsize

    # Generation-aware VMEM budget (v7x has 64 MiB vs 128 MiB on v5e/v6e).
    try:
        vmem_cap = int(pltpu.get_tpu_info().vmem_capacity_bytes)
    except Exception:
        vmem_cap = 64 * 1024 * 1024   # v7x floor: safe on every generation

    # Tile the token axis: biggest lane-aligned tile whose double-buffered working set
    # stays inside ~40% of VMEM (headroom for compiler scratch / regalloc).
    per_tok_bytes = 2 * ((j + 1) * e * in_bytes + (2 * j + 1) * 4) + j * 4
    if tile_n is None:
        tile_n = int(0.4 * vmem_cap) // per_tok_bytes
    tile_n = max(128, (tile_n // 128) * 128)
    tile_n = min(tile_n, 2048, max(128, -(-n // 128) * 128))

    n_pad = -(-n // tile_n) * tile_n
    pad = n_pad - n
    if pad:
        emb_t = jnp.pad(emb_t, ((0, 0), (0, pad)))
        w_sel = jnp.pad(w_sel, ((0, 0), (0, 0), (0, pad)))
        b_sel = jnp.pad(b_sel, ((0, 0), (0, pad)))
        lkq_sel = jnp.pad(lkq_sel, ((0, 0), (0, pad)))       # log(k*q)=0 -> finite

    grid = (n_pad // tile_n,)

    # Actual double-buffered block bytes -> vmem_limit (never below the 32 MiB default,
    # never above ~85% of physical VMEM).
    buf_bytes = (2 * (e * tile_n * in_bytes + j * e * tile_n * in_bytes
                      + 2 * j * tile_n * 4 + tile_n * 4)
                 + j * tile_n * 4)
    vmem_limit = int(min(0.85 * vmem_cap, max(32 << 20, buf_bytes + (16 << 20))))

    kernel = functools.partial(_nce_kernel, norm_term=norm_term,
                               n_valid=n, tile_n=tile_n)

    per_token = pl.pallas_call(
        kernel,
        out_shape=jax.ShapeDtypeStruct((1, n_pad), jnp.float32),
        grid=grid,
        in_specs=[
            pl.BlockSpec((e, tile_n), lambda i: (0, i)),          # emb   (E, TN)
            pl.BlockSpec((j, e, tile_n), lambda i: (0, 0, i)),    # w     (J, E, TN)
            pl.BlockSpec((j, tile_n), lambda i: (0, i)),          # bias  (J, TN)
            pl.BlockSpec((j, tile_n), lambda i: (0, i)),          # log(k*q) (J, TN)
        ],
        out_specs=pl.BlockSpec((1, tile_n), lambda i: (0, i)),    # per-token loss
        scratch_shapes=[pltpu.VMEM((j, tile_n), jnp.float32)],    # scores scratch
        compiler_params=pltpu.CompilerParams(
            dimension_semantics=("parallel",),      # independent tiles -> megacore-friendly
            vmem_limit_bytes=vmem_limit),
    )(emb_t, w_sel, b_sel, lkq_sel)

    loss = jnp.sum(per_token)          # padded columns were zeroed in-kernel
    if size_average:
        loss = loss / jnp.float32(n)
    return loss


def nce_loss_ref(emb, target, noise_idx, weight, bias, noise, *,
                 noise_ratio=10, norm_term=9, size_average=True):
    """Pure-JAX reference of the PyTorch training branch."""
    indices = jnp.concatenate([target[:, None], noise_idx], axis=1)
    w_sel = weight[indices]                                  # (N, J, E)
    b_sel = bias[indices]                                    # (N, J)
    out = jnp.einsum('ne,nje->nj', emb, w_sel) + b_sel
    probs = jnp.exp(out - norm_term)
    data_prob = probs[:, 0]
    noise_in_data = probs[:, 1:]
    noise_probs = noise[noise_idx]
    rnn_loss = jnp.log(data_prob / (data_prob + noise_ratio * noise[target]))
    noise_loss = jnp.sum(
        jnp.log(noise_ratio * noise_probs / (noise_in_data + noise_ratio * noise_probs)),
        axis=1)
    loss = -jnp.sum(rnn_loss + noise_loss)
    if size_average:
        loss = loss / target.shape[0]
    return loss


if __name__ == "__main__":
    N, E, V, NR, NORM = 8, 32, 64, 10, 9

    key = jax.random.PRNGKey(0)
    k_emb, k_w, k_noise, k_tgt, k_samp = jax.random.split(key, 5)

    # Deterministic parameter init (IndexLinear.reset_parameters: bias=0, weight~U(-0.1,0.1)).
    weight = jax.random.uniform(k_w, (V, E), jnp.float32, -0.1, 0.1)
    bias = jnp.zeros((V,), jnp.float32)

    # Noise distribution over the vocabulary.
    noise_unnorm = jax.random.uniform(k_noise, (V,), jnp.float32, 0.5, 1.5)
    noise = noise_unnorm / jnp.sum(noise_unnorm)

    # Inputs.
    emb = jax.random.normal(k_emb, (N, E), jnp.float32)
    target = jax.random.randint(k_tgt, (N,), 0, V, jnp.int32)
    # TODO(synk): AliasMethod sampling is a stochastic host-side draw, not a kernel hot
    # path; replaced by jax.random.categorical over the same noise distribution (per_word).
    noise_idx = jax.random.categorical(k_samp, jnp.log(noise), shape=(N, NR)).astype(jnp.int32)

    # Pre-round emb / weight to bf16 so the bf16-streaming kernel and the f32 reference
    # consume numerically identical operands (apples-to-apples correctness check).
    emb_r = emb.astype(jnp.bfloat16).astype(jnp.float32)
    weight_r = weight.astype(jnp.bfloat16).astype(jnp.float32)

    loss = nce_loss_pallas(emb_r, target, noise_idx, weight_r, bias, noise,
                           noise_ratio=NR, norm_term=NORM, size_average=True)
    loss = jax.block_until_ready(loss)

    ref = nce_loss_ref(emb_r, target, noise_idx, weight_r, bias, noise,
                       noise_ratio=NR, norm_term=NORM, size_average=True)
    assert jnp.allclose(loss, ref, rtol=1e-4, atol=1e-4), (loss, ref)
    print("KERNEL_OK")
</pallas_src>

<mosaic_0001>
module attributes {stable_mosaic.version = 11 : i64} {
  func.func @_nce_kernel(%arg0: i32, %arg1: memref<32x128xbf16, #tpu.memory_space<vmem>>, %arg2: memref<11x32x128xbf16, #tpu.memory_space<vmem>>, %arg3: memref<11x128xf32, #tpu.memory_space<vmem>>, %arg4: memref<11x128xf32, #tpu.memory_space<vmem>>, %arg5: memref<1x128xf32, #tpu.memory_space<vmem>>, %arg6: memref<11x128xf32, #tpu.memory_space<vmem>>) attributes {dimension_semantics = [#tpu.dimension_semantics<parallel>], iteration_bounds = array<i64: 1>, scalar_prefetch = 0 : i64, scratch_operands = 1 : i64, tpu.core_type = #tpu.core_type<tc>, window_params = [{transform_indices = @transform_0, window_bounds = array<i64: 32, 128>}, {transform_indices = @transform_1, window_bounds = array<i64: 11, 32, 128>}, {transform_indices = @transform_2, window_bounds = array<i64: 11, 128>}, {transform_indices = @transform_3, window_bounds = array<i64: 11, 128>}, {transform_indices = @transform_4, window_bounds = array<i64: 1, 128>}]} {
    %c0 = arith.constant 0 : index
    %c0_0 = arith.constant 0 : index
    %0 = vector.load %arg1[%c0, %c0_0] : memref<32x128xbf16, #tpu.memory_space<vmem>>, vector<32x128xbf16>
    %1 = arith.extf %0 : vector<32x128xbf16> to vector<32x128xf32>
    %c0_i32 = arith.constant 0 : i32
    %c11_i32 = arith.constant 11 : i32
    %2 = arith.addi %c0_i32, %c11_i32 : i32
    %c1_i32 = arith.constant 1 : i32
    scf.for %arg7 = %c0_i32 to %2 step %c1_i32  : i32 {
      %c1_i32_14 = arith.constant 1 : i32
      %35 = arith.muli %arg7, %c1_i32_14 : i32
      %c0_i32_15 = arith.constant 0 : i32
      %36 = arith.addi %c0_i32_15, %35 : i32
      %37 = arith.index_cast %36 : i32 to index
      %c0_16 = arith.constant 0 : index
      %c0_17 = arith.constant 0 : index
      %38 = vector.load %arg2[%37, %c0_16, %c0_17] : memref<11x32x128xbf16, #tpu.memory_space<vmem>>, vector<1x32x128xbf16>
      %39 = vector.shape_cast %38 : vector<1x32x128xbf16> to vector<32x128xbf16>
      %40 = arith.extf %39 : vector<32x128xbf16> to vector<32x128xf32>
      %41 = arith.mulf %40, %1 : vector<32x128xf32>
      %cst_18 = arith.constant dense<0.000000e+00> : vector<128xf32>
      %42 = vector.multi_reduction <add>, %41, %cst_18 [0] : vector<32x128xf32> to vector<128xf32>
      %43 = vector.shape_cast %42 : vector<128xf32> to vector<1x128xf32>
      %44 = arith.index_cast %36 : i32 to index
      %c0_19 = arith.constant 0 : index
      %45 = vector.load %arg6[%44, %c0_19] : memref<11x128xf32, #tpu.memory_space<vmem>>, vector<1x128xf32>
      tpu.vector_store %arg6[%44, %c0_19], %43 {strides = array<i32>} : memref<11x128xf32, #tpu.memory_space<vmem>>, vector<1x128xf32>,
    }
    %c11_i32_1 = arith.constant 11 : i32
    %c0_2 = arith.constant 0 : index
    %c0_3 = arith.constant 0 : index
    %3 = vector.load %arg6[%c0_2, %c0_3] : memref<11x128xf32, #tpu.memory_space<vmem>>, vector<11x128xf32>
    %c0_4 = arith.constant 0 : index
    %c0_5 = arith.constant 0 : index
    %4 = vector.load %arg3[%c0_4, %c0_5] : memref<11x128xf32, #tpu.memory_space<vmem>>, vector<11x128xf32>
    %5 = arith.addf %3, %4 : vector<11x128xf32>
    %cst = arith.constant 9.000000e+00 : f32
    %6 = vector.broadcast %cst : f32 to vector<11x128xf32>
    %7 = arith.subf %5, %6 : vector<11x128xf32>
    %c0_6 = arith.constant 0 : index
    %c0_7 = arith.constant 0 : index
    %8 = vector.load %arg4[%c0_6, %c0_7] : memref<11x128xf32, #tpu.memory_space<vmem>>, vector<11x128xf32>
    %9 = arith.maximumf %7, %8 : vector<11x128xf32>
    %10 = arith.subf %7, %9 : vector<11x128xf32>
    %11 = math.exp %10 : vector<11x128xf32>
    %12 = arith.subf %8, %9 : vector<11x128xf32>
    %13 = math.exp %12 : vector<11x128xf32>
    %14 = arith.addf %11, %13 : vector<11x128xf32>
    %15 = math.log %14 : vector<11x128xf32>
    %16 = arith.addf %9, %15 : vector<11x128xf32>
    %17 = tpu.iota {dimensions = array<i32: 0>} : vector<11x128xi32>
    %c0_i32_8 = arith.constant 0 : i32
    %18 = vector.broadcast %c0_i32_8 : i32 to vector<11x128xi32>
    %19 = arith.cmpi eq, %17, %18 : vector<11x128xi32>
    %20 = arith.select %19, %7, %8 : vector<11x128xi1>, vector<11x128xf32>
    %21 = arith.subf %20, %16 : vector<11x128xf32>
    %cst_9 = arith.constant dense<0.000000e+00> : vector<128xf32>
    %22 = vector.multi_reduction <add>, %21, %cst_9 [0] : vector<11x128xf32> to vector<128xf32>
    %23 = vector.shape_cast %22 : vector<128xf32> to vector<1x128xf32>
    %c128_i32 = arith.constant 128 : i32
    %24 = arith.muli %arg0, %c128_i32 : i32
    %25 = tpu.iota {dimensions = array<i32: 1>} : vector<1x128xi32>
    %26 = vector.broadcast %24 : i32 to vector<1x128xi32>
    %27 = arith.addi %26, %25 : vector<1x128xi32>
    %c8_i32 = arith.constant 8 : i32
    %28 = vector.broadcast %c8_i32 : i32 to vector<1x128xi32>
    %29 = arith.cmpi slt, %27, %28 : vector<1x128xi32>
    %cst_10 = arith.constant 0.000000e+00 : f32
    %30 = vector.broadcast %cst_10 : f32 to vector<1x128xf32>
    %31 = arith.subf %30, %23 : vector<1x128xf32>
    %cst_11 = arith.constant 0.000000e+00 : f32
    %32 = vector.broadcast %cst_11 : f32 to vector<1x128xf32>
    %33 = arith.select %29, %31, %32 : vector<1x128xi1>, vector<1x128xf32>
    %c0_12 = arith.constant 0 : index
    %c0_13 = arith.constant 0 : index
    %34 = vector.load %arg5[%c0_12, %c0_13] : memref<1x128xf32, #tpu.memory_space<vmem>>, vector<1x128xf32>
    tpu.vector_store %arg5[%c0_12, %c0_13], %33 {strides = array<i32>} : memref<1x128xf32, #tpu.memory_space<vmem>>, vector<1x128xf32>,
    return
  }
  func.func @transform_0(%arg0: i32) -> (i32, i32) {
    %c0_i32 = arith.constant 0 : i32
    %c0_i32_0 = arith.constant 0 : i32
    return %c0_i32, %arg0 : i32, i32
  }
  func.func @transform_1(%arg0: i32) -> (i32, i32, i32) {
    %c0_i32 = arith.constant 0 : i32
    %c0_i32_0 = arith.constant 0 : i32
    %c0_i32_1 = arith.constant 0 : i32
    return %c0_i32, %c0_i32_0, %arg0 : i32, i32, i32
  }
  func.func @transform_2(%arg0: i32) -> (i32, i32) {
    %c0_i32 = arith.constant 0 : i32
    %c0_i32_0 = arith.constant 0 : i32
    return %c0_i32, %arg0 : i32, i32
  }
  func.func @transform_3(%arg0: i32) -> (i32, i32) {
    %c0_i32 = arith.constant 0 : i32
    %c0_i32_0 = arith.constant 0 : i32
    return %c0_i32, %arg0 : i32, i32
  }
  func.func @transform_4(%arg0: i32) -> (i32, i32) {
    %c0_i32 = arith.constant 0 : i32
    %c0_i32_0 = arith.constant 0 : i32
    return %c0_i32, %arg0 : i32, i32
  }
}

</mosaic_0001>

<bundles_post_ra>
// kernel: tpu_custom_call.1
= control target key start
LH: loop header
LB: loop body
LE: loop exit
PB: predicated region body
PF: predicated region fallthrough
CT: control target
= control target key end

     0   :  { %9 = vsyncpa [#allocation4], 0  ;;  %s481_s0 = inlined_call_operand.hbm [shape: bf16[32,128], index: 0, kind: input, shape index: {}]   ;;  %s482_s1 = inlined_call_operand.hbm [shape: bf16[11,32,128], index: 1, kind: input, shape index: {}]   ;;  %s483_s2 = inlined_call_operand.hbm [shape: f32[11,128], index: 2, kind: input, shape index: {}]   ;;  %s484_s3 = inlined_call_operand.hbm [shape: f32[11,128], index: 3, kind: input, shape index: {}]   ;;  %s485_s4 = inlined_call_operand.hbm [shape: f32[1,128], index: 4, kind: output, shape index: {}]  }
   0x1   :  { %10 = vsyncpa [#allocation7], 0 }
   0x2   :  { %11 = vsyncpa [#allocation10], 0 }
   0x3   :  { %12 = vsyncpa [#allocation5], 0  ;;  %s375_s15 = smov [#allocation6]   ;;  %s376_s17 = smov [#allocation3]  }
   0x4   :  { %s30_s16 = sshll.u32 %s375_s15, 4  ;;  %s18_s18 = sshll.u32 %s376_s17, 4  ;;  %s31_s16 = int_to_ptr.vmem [resolvable:$true] %s30_s16  ;;  %s409_s18 = int_to_ptr.vmem [resolvable:$true] %s18_s18 }
   0x5   :  { %s249_s21 = scalar_lea.hbm %s482_s1, 2816 }
   0x6   :  { %p250_p0 = scmp.ne.s32.totalorder %s482_s1, %s249_s21  ;;  %p253_p1 = scmp.lt.u32.totalorder %s249_s21, %s482_s1 }
   0x8   :  { %p255_p2 = pnand %p253_p1, %p250_p0 }
   0xa   :  { %258 = shalt.err (!%p255_p2)
}
   0xb   :  { %s259_s26 = scalar_lea.vmem %s31_s16, 2816  ;;  %p264_p4 = scmp.lt.s32.totalorder %s31_s16, %s31_s16 }
   0xc   :  { %p260_p3 = scmp.ne.s32.totalorder %s31_s16, %s259_s26  ;;  %p265_p5 = scmp.lt.s32.totalorder %s259_s26, %s259_s26 }
   0xe   :  { %p266_p6 = por %p265_p5, %p264_p4 }
  0x10   :  { %p267_p7 = pnand %p266_p6, %p260_p3 }
  0x12   :  { %270 = shalt.err (!%p267_p7)
}
  0x13   :  { %s377_s27 = smov 64   ;;  %s378_s28 = smov 4  }
  0x14   :  { %36 = dma.hbm_to_vmem [thread:$0]  %s482_s1, 2816, %s31_s16, [#allocation7], %s377_s27, %s377_s27, %s378_s28  }
  0x15   :  { %s271_s7 = scalar_lea.hbm %s481_s0, 256 }
  0x16   :  { %p272_p8 = scmp.ne.s32.totalorder %s481_s0, %s271_s7  ;;  %p275_p9 = scmp.lt.u32.totalorder %s271_s7, %s481_s0 }
  0x18   :  { %p277_p10 = pnand %p275_p9, %p272_p8 }
  0x1a   :  { %280 = shalt.err (!%p277_p10)
}
  0x1b   :  { %s281_s12 = scalar_lea.vmem %s409_s18, 256  ;;  %p286_p12 = scmp.lt.s32.totalorder %s409_s18, %s409_s18 }
  0x1c   :  { %p282_p11 = scmp.ne.s32.totalorder %s409_s18, %s281_s12  ;;  %p287_p13 = scmp.lt.s32.totalorder %s281_s12, %s281_s12 }
  0x1e   :  { %p288_p0 = por %p287_p13, %p286_p12 }
  0x20   :  { %p289_p1 = pnand %p288_p0, %p282_p11 }
  0x22   :  { %292 = shalt.err (!%p289_p1)
}
  0x23   :  { %24 = dma.hbm_to_vmem [thread:$0]  %s481_s0, 256, %s409_s18, [#allocation4], %s377_s27, %s377_s27, %s378_s28  }
  0x24   :  { %s379_s14 = smov [#allocation8]   ;;  %s293_s19 = scalar_lea.hbm %s483_s2, 256 }
  0x25   :  { %s42_s15 = sshll.u32 %s379_s14, 4  ;;  %p294_p2 = scmp.ne.s32.totalorder %s483_s2, %s293_s19  ;;  %s43_s15 = int_to_ptr.vmem [resolvable:$true] %s42_s15 }
  0x26   :  { %p297_p3 = scmp.lt.u32.totalorder %s293_s19, %s483_s2 }
  0x28   :  { %p299_p4 = pnand %p297_p3, %p294_p2 }
  0x2a   :  { %302 = shalt.err (!%p299_p4)
}
  0x2b   :  { %s303_s24 = scalar_lea.vmem %s43_s15, 256  ;;  %p308_p6 = scmp.lt.s32.totalorder %s43_s15, %s43_s15 }
  0x2c   :  { %p304_p5 = scmp.ne.s32.totalorder %s43_s15, %s303_s24  ;;  %p309_p7 = scmp.lt.s32.totalorder %s303_s24, %s303_s24 }
  0x2e   :  { %p310_p8 = por %p309_p7, %p308_p6 }
  0x30   :  { %p311_p9 = pnand %p310_p8, %p304_p5 }
  0x32   :  { %314 = shalt.err (!%p311_p9)
}
  0x33   :  { %s380_s0 = smov 128   ;;  %s381_s18 = smov 8  }
  0x34   :  { %48 = dma.hbm_to_vmem [thread:$0]  %s483_s2, 256, %s43_s15, [#allocation7], %s380_s0, %s380_s0, %s381_s18  }
  0x35   :  { %s382_s27 = smov [#allocation9]   ;;  %s315_s5 = scalar_lea.hbm %s484_s3, 256 }
  0x36   :  { %s54_s28 = sshll.u32 %s382_s27, 4  ;;  %p316_p10 = scmp.ne.s32.totalorder %s484_s3, %s315_s5  ;;  %s55_s28 = int_to_ptr.vmem [resolvable:$true] %s54_s28 }
  0x37   :  { %p319_p11 = scmp.lt.u32.totalorder %s315_s5, %s484_s3 }
  0x39   :  { %p321_p12 = pnand %p319_p11, %p316_p10 }
  0x3b   :  { %324 = shalt.err (!%p321_p12)
}
  0x3c   :  { %s325_s10 = scalar_lea.vmem %s55_s28, 256  ;;  %p330_p0 = scmp.lt.s32.totalorder %s55_s28, %s55_s28 }
  0x3d   :  { %p326_p13 = scmp.ne.s32.totalorder %s55_s28, %s325_s10  ;;  %p331_p1 = scmp.lt.s32.totalorder %s325_s10, %s325_s10 }
  0x3f   :  { %p332_p2 = por %p331_p1, %p330_p0 }
  0x41   :  { %p333_p3 = pnand %p332_p2, %p326_p13 }
  0x43   :  { %336 = shalt.err (!%p333_p3)
}
  0x44   :  { %60 = dma.hbm_to_vmem [thread:$0]  %s484_s3, 256, %s55_s28, [#allocation10], %s380_s0, %s380_s0, %s381_s18  }
  0x45   :  { %363 = dma.done.wait [#allocation4], 256  }
  0x46   :  { %364 = vsyncadd [#allocation4], 4294967040 }
  0x47   :  { %365 = dma.done.wait [#allocation7], 3072  }
  0x48   :  { %366 = vsyncadd [#allocation7], 4294964224 }
  0x49   :  { %367 = dma.done.wait [#allocation10], 256  }
  0x4a   :  { %368 = vsyncadd [#allocation10], 4294967040  ;;  %v203_v0 = vld [vmem:[#allocation3] sm:$0xff]   ;;  %v218_v1 = vld [vmem:[#allocation3 + $0x8] sm:$0xff]   ;;  %s464_s12 = smov 0  }
  0x4b   :  { %v204_v2 = vunpack.c.l.bf16 %v203_v0  ;;  %v205_v3 = vunpack.c.h.bf16 %v203_v0  ;;  %v208_v4 = vunpack.c.l.bf16 %v218_v1  ;;  %v209_v5 = vunpack.c.h.bf16 %v218_v1 }
  0x4c LB: > { %s201_s1 = sshll.u32 %s373_s12, 4  ;;  %s111_s13 = scalar_lea.vmem [#allocation2], %s373_s12  ;;  %s373_s12 = sphi %s464_s12, %s86_s12  }
  0x4d   : > { %s89_s3 = scalar_lea.vmem [#allocation6], %s201_s1  ;;  %s86_s12 = sadd.s32 1, %s373_s12  }
  0x4e   : > { %v211_v6 = vld [vmem:[%s89_s3] sm:$0xff]   ;;  %v219_v7 = vld [vmem:[%s89_s3 + $0x8] sm:$0xff]   ;;  %p83_p4 = scmp.ge.s32.totalorder %s86_s12, 11  }
  0x4f   : > { %v212_v8 = vunpack.c.l.bf16 %v211_v6  ;;  %v213_v9 = vunpack.c.h.bf16 %v211_v6  ;;  %v216_v10 = vunpack.c.l.bf16 %v219_v7  ;;  %v217_v11 = vunpack.c.h.bf16 %v219_v7  ;;  %v115_v27 = vld [vmem:[#allocation8] sm:$0xff] (%p83_p4)  ;;  %v116_v28 = vld [vmem:[#allocation8 + $0x8] sm:$0x7] (%p83_p4)  ;;  %v121_v31 = vld [vmem:[#allocation9] sm:$0xff] (%p83_p4)  ;;  %s383_s14 = smov (%p83_p4), [#allocation11]  }
  0x50   :  { %v122_v33 = vld [vmem:[#allocation9 + $0x8] sm:$0x7] (%p83_p4)  ;;  %v145_v51 = vlaneseq (%p83_p4)  ;;  %vm154_vm1 = vcmask (%p83_p4), 1042432   ;;  %s178_s15 = sshll.u32 (%p83_p4), %s383_s14, 4  ;;  %s179_s15 = int_to_ptr.vmem [resolvable:$true] %s178_s15 }
  0x51   : > { %v98_v12 = vmul.f32 %v212_v8, %v204_v2  ;;  %v99_v13 = vmul.f32 %v213_v9, %v205_v3  ;;  %v100_v14 = vmul.f32 %v216_v10, %v208_v4  ;;  %v101_v15 = vmul.f32 %v217_v11, %v209_v5  ;;  %s337_s16 = scalar_lea.vmem (%p83_p4), %s179_s15, 16  ;;  %s341_s17 = scalar_lea.vmem (%p83_p4), %s179_s15, 32 }
  0x52   :  { %v146_v52 = vshrl.u32 (%p83_p4), %v145_v51, 7  ;;  %v165_v4 = vand.u32 (%p83_p4), 127, %v145_v51  ;;  %p338_p5 = scmp.ne.s32.totalorder (%p83_p4), %s179_s15, %s337_s16  ;;  %p342_p6 = scmp.lt.s32.totalorder (%p83_p4), %s179_s15, %s179_s15 }
  0x53   : > { %v102_v16 = vadd.f32 %v99_v13, %v98_v12  ;;  %p343_p7 = scmp.lt.s32.totalorder (%p83_p4), %s341_s17, %s337_s16 }
  0x54   :  { %vm148_vm0 = vcmp.eq.s32.totalorder (%p83_p4), %v146_v52, 0  ;;  %vm168_vm2 = vcmp.lt.s32.totalorder (%p83_p4), %v165_v4, 8 }
  0x55   : > { %v103_v17 = vadd.f32 %v102_v16, %v100_v14  ;;  %p344_p8 = por (%p83_p4), %p343_p7, %p342_p6 }
  0x57   : > { %v104_v18 = vadd.f32 %v103_v17, %v101_v15  ;;  %p345_p9 = pnand (%p83_p4), %p344_p8, %p338_p5 }
  0x59   : > { %v105_v19 = vrot.slane %v104_v18, 4 }
  0x5b   : > { %v106_v20 = vadd.f32 %v105_v19, %v104_v18 }
  0x5d   : > { %v107_v21 = vrot.slane %v106_v20, 2 }
  0x5f   : > { %v108_v22 = vadd.f32 %v107_v21, %v106_v20  ;;  %85 = sbr.rel (!%p83_p4) target bundleno = 76 (0x4c), region = 61 }
  0x61   : > { %v109_v23 = vrot.slane %v108_v22, 1 }
  0x63   : > { %v110_v24 = vadd.f32 %v109_v23, %v108_v22 }
  0x65   : > { %112 = vst [vmem:[%s111_s13] sm:$0x1] %v110_v24 }
  0x6c   :  { %v113_v25 = vld [vmem:[#allocation2] sm:$0xff]  ;;  %v114_v26 = vld [vmem:[#allocation2 + $0x8] sm:$0x7] }
  0x6d   :  { %v117_v29 = vadd.f32 %v115_v27, %v113_v25  ;;  %v118_v30 = vadd.f32 %v116_v28, %v114_v26 }
  0x6f   :  { %v199_v32 = vadd.f32 -9.0, %v117_v29  ;;  %v200_v34 = vadd.f32 -9.0, %v118_v30 }
  0x71   :  { %v123_v35 = vmax.f32 %v199_v32, %v121_v31  ;;  %v124_v36 = vmax.f32 %v200_v34, %v122_v33  ;;  %v150_v57 = vsel %vm148_vm0, %v199_v32, %v121_v31 }
  0x73   :  { %v125_v37 = vsub.f32 %v199_v32, %v123_v35  ;;  %v131_v38 = vsub.f32 %v121_v31, %v123_v35  ;;  %v126_v39 = vsub.f32 %v200_v34, %v124_v36  ;;  %v132_v40 = vsub.f32 %v122_v33, %v124_v36 }
  0x75   :  { %v127_v41 = vmul.f32 1.442695, %v125_v37  ;;  %v133_v42 = vmul.f32 1.442695, %v131_v38  ;;  %v129_v43 = vmul.f32 1.442695, %v126_v39 }
  0x76   :  { %v135_v44 = vmul.f32 1.442695, %v132_v40 }
  0x77   :  { %237 = vpow2.f32 %v127_v41 }
  0x78   :  { %239 = vpow2.f32 %v129_v43 }
  0x79   :  { %241 = vpow2.f32 %v133_v42 }
  0x7a   :  { %243 = vpow2.f32 %v135_v44 }
  0x81   :  { %v238_v45 = vpop.eup %237 }
  0x82   :  { %v240_v46 = vpop.eup %239 }
  0x83   :  { %v242_v47 = vpop.eup %241 }
  0x84   :  { %v244_v48 = vpop.eup %243  ;;  %v137_v49 = vadd.f32 %v242_v47, %v238_v45 }
  0x85   :  { %v138_v50 = vadd.f32 %v244_v48, %v240_v46 }
  0x86   :  { %245 = vlog2.f32 %v137_v49 }
  0x87   :  { %247 = vlog2.f32 %v138_v50 }
  0x90   :  { %v246_v53 = vpop.eup %245 }
  0x91   :  { %v248_v54 = vpop.eup %247  ;;  %v140_v55 = vmul.f32 0.6931472, %v246_v53 }
  0x92   :  { %v142_v56 = vmul.f32 0.6931472, %v248_v54 }
  0x93   :  { %v143_v58 = vadd.f32 %v140_v55, %v123_v35 }
  0x94   :  { %v144_v59 = vadd.f32 %v142_v56, %v124_v36 }
  0x95   :  { %v152_v60 = vsub.f32 %v150_v57, %v143_v58 }
  0x96   :  { %v153_v61 = vsub.f32 %v122_v33, %v144_v59 }
  0x98   :  { %v155_v62 = vsel %vm154_vm1, %v153_v61, 0.0 }
  0x99   :  { %v156_v63 = vadd.f32 %v155_v62, %v152_v60 }
  0x9b   :  { %v157_v0 = vrot.slane %v156_v63, 4 }
  0x9d   :  { %v158_v1 = vadd.f32 %v157_v0, %v156_v63 }
  0x9f   :  { %v159_v2 = vrot.slane %v158_v1, 2 }
  0xa1   :  { %v160_v3 = vadd.f32 %v159_v2, %v158_v1 }
  0xa3   :  { %v161_v5 = vrot.slane %v160_v3, 1 }
  0xa5   :  { %v162_v6 = vadd.f32 %v161_v5, %v160_v3 }
  0xa7   :  { %v169_v7 = vsub.f32 0.0, %v162_v6 }
  0xa9   :  { %v170_v8 = vsel %vm168_vm2, %v169_v7, 0.0 }
  0xaa   :  { %171 = vst [vmem:[#allocation11] sm:$0x1] %v170_v8 }
  0xab   :  { %348 = shalt.err (!%p345_p9)
}
  0xac   :  { %s349_s21 = scalar_lea.hbm %s485_s4, 16 }
  0xad   :  { %p350_p10 = scmp.ne.s32.totalorder %s485_s4, %s349_s21  ;;  %p353_p11 = scmp.lt.u32.totalorder %s349_s21, %s485_s4 }
  0xaf   :  { %p355_p12 = pnand %p353_p11, %p350_p10 }
  0xb1   :  { %358 = shalt.err (!%p355_p12)
}
  0xb2   :  { %181 = dma.vmem_to_hbm [thread:$0]  %s179_s15, 16, %s485_s4, [#allocation5]  }
  0xb3   :  { %369 = dma.done.wait [#allocation5], 16  }
  0xb4   :  { %370 = vsyncadd [#allocation5], 4294967280 }
  0xb5   :  { %185 = vsyncpa [#allocation4], 1 }
  0xb6   :  { %186 = vsyncpa [#allocation7], 1 }
  0xb7   :  { %187 = vsyncpa [#allocation10], 1 }
  0xb8   :  { %188 = vsyncpa [#allocation5], 1 }

</bundles_post_ra>
